<compile_context>
chip_gen: v6e
topology: v6e:2x2x1
jax: 0.10.0
libtpu: 0.0.40
codegen_flags: <defaults>
</compile_context>

<pallas_src>
import jax
import jax.numpy as jnp
from jax.experimental import pallas as pl
from jax.experimental.pallas import tpu as pltpu

NUM_INPUT = 28
OUT_PAD = 128          # lane-dense padded width of the output projection


def _rnn_kernel(x_ref, h0_ref, wih_ref, whh_ref, brnn_ref, wlin_ref, blin_ref,
                out_ref, hn_ref, hs_ref):
    # Static shapes.
    seq_batch, hidden = hs_ref.shape
    batch = h0_ref.shape[1]
    seq = seq_batch // batch

    # --- Hoisted input projection, kept in vregs (off the serial chain) -----
    #   xp[t*B + b, :] = onehot(x)[t, b, :] @ W_ih^T + (b_ih + b_hh)
    xp = (
        jnp.dot(x_ref[...], wih_ref[...], preferred_element_type=jnp.float32)
        + brnn_ref[...]
    )                                              # (seq*batch, H) f32 value

    whh = whh_ref[...]                             # (H, H) bf16, resident
    h = h0_ref[0]                                  # (batch, H) f32

    # --- Serial recurrence: only h @ W_hh^T (bf16 operands) + tanh per step --
    # Fully unrolled static loop (seq is small); xp sliced with static indices.
    for t in range(seq):
        row = t * batch
        pre = xp[row:row + batch, :] + jnp.dot(
            h.astype(jnp.bfloat16), whh, preferred_element_type=jnp.float32)
        h = jnp.tanh(pre)
        # Store is off the serial dependency chain; LLO can overlap it.
        hs_ref[pl.ds(row, batch), :] = h

    hn_ref[0] = h                                  # final hidden state, once

    # --- Deferred, lane-dense output projection: one matmul + one store -----
    out_ref[...] = (
        jnp.dot(hs_ref[...], wlin_ref[...], preferred_element_type=jnp.float32)
        + blin_ref[...]
    )


def rnn_time_machine_forward(tokens, state, params):
    """tokens: (batch, seq) int32; state: (1, batch, H) f32 -> (output, h_n)."""
    batch, seq = tokens.shape
    hidden = params["W_hh"].shape[0]

    # Glue: one-hot of inputs.T, flattened time-major -> (seq*batch, 28) f32.
    x = jax.nn.one_hot(tokens.T.reshape(-1), NUM_INPUT, dtype=jnp.float32)

    wih_t = params["W_ih"].T                                   # (28, H) f32
    whh_t = params["W_hh"].T.astype(jnp.bfloat16)              # (H, H) bf16
    b_rnn = (params["b_ih"] + params["b_hh"]).reshape(1, hidden)

    # Zero-pad the output projection to 128 lanes (lane-dense store, MXU-aligned N).
    wlin_t = jnp.zeros((hidden, OUT_PAD), jnp.float32)
    wlin_t = wlin_t.at[:, :NUM_INPUT].set(params["W_lin"].T)   # (H, 128)
    b_lin = jnp.zeros((1, OUT_PAD), jnp.float32)
    b_lin = b_lin.at[:, :NUM_INPUT].set(params["b_lin"].reshape(1, NUM_INPUT))

    out_pad, h_n = pl.pallas_call(
        _rnn_kernel,
        out_shape=(
            jax.ShapeDtypeStruct((seq * batch, OUT_PAD), jnp.float32),
            jax.ShapeDtypeStruct((1, batch, hidden), jnp.float32),
        ),
        scratch_shapes=[
            pltpu.VMEM((seq * batch, hidden), jnp.float32),    # hs: all hidden states
        ],
    )(x, state, wih_t, whh_t, b_rnn, wlin_t, b_lin)

    return out_pad[:, :NUM_INPUT], h_n


def _ref_forward(tokens, state, params):
    """Pure-JAX f32 reference of the PyTorch forward."""
    hidden = params["W_hh"].shape[0]
    x = jax.nn.one_hot(tokens.T, NUM_INPUT, dtype=jnp.float32)   # (seq, batch, 28)

    def step(h, xt):
        h_new = jnp.tanh(xt @ params["W_ih"].T + params["b_ih"]
                         + h @ params["W_hh"].T + params["b_hh"])
        return h_new, h_new

    h_last, ys = jax.lax.scan(step, state[0], x)
    out = ys.reshape(-1, hidden) @ params["W_lin"].T + params["b_lin"]
    return out, h_last[None]


def _init_params(key, hidden):
    """Deterministic init mirroring PyTorch shapes (U(-1/sqrt(H), 1/sqrt(H)))."""
    ks = jax.random.split(key, 6)
    bound = 1.0 / jnp.sqrt(hidden)
    u = lambda k, shape: jax.random.uniform(k, shape, jnp.float32, -bound, bound)
    return {
        "W_ih": u(ks[0], (hidden, NUM_INPUT)),   # nn.RNN weight_ih_l0
        "W_hh": u(ks[1], (hidden, hidden)),      # nn.RNN weight_hh_l0
        "b_ih": u(ks[2], (hidden,)),
        "b_hh": u(ks[3], (hidden,)),
        "W_lin": u(ks[4], (NUM_INPUT, hidden)),  # nn.Linear(H, 28)
        "b_lin": u(ks[5], (NUM_INPUT,)),
    }


if __name__ == "__main__":
    # Small, TPU-friendly shapes; hidden is a multiple of 128 (lane-dense).
    batch, seq, hidden = 8, 8, 128

    key = jax.random.PRNGKey(0)
    k_tok, k_par = jax.random.split(key)
    tokens = jax.random.randint(k_tok, (batch, seq), 0, NUM_INPUT, dtype=jnp.int32)
    state = jnp.zeros((1, batch, hidden), jnp.float32)     # begin_state
    params = _init_params(k_par, hidden)

    out, h_n = rnn_time_machine_forward(tokens, state, params)
    out, h_n = jax.block_until_ready((out, h_n))

    ref_out, ref_hn = _ref_forward(tokens, state, params)
    assert out.shape == (seq * batch, NUM_INPUT) and h_n.shape == (1, batch, hidden)
    # Tolerance loosened: recurrence matmul uses bf16 operands (f32 accumulate).
    assert jnp.allclose(out, ref_out, atol=3e-2, rtol=3e-2)
    assert jnp.allclose(h_n, ref_hn, atol=3e-2, rtol=3e-2)

    print("KERNEL_OK")
</pallas_src>

<mosaic_0001>
module attributes {stable_mosaic.version = 11 : i64} {
  func.func @_rnn_kernel(%arg0: memref<64x28xf32, #tpu.memory_space<vmem>>, %arg1: memref<1x8x128xf32, #tpu.memory_space<vmem>>, %arg2: memref<28x128xf32, #tpu.memory_space<vmem>>, %arg3: memref<128x128xbf16, #tpu.memory_space<vmem>>, %arg4: memref<1x128xf32, #tpu.memory_space<vmem>>, %arg5: memref<128x128xf32, #tpu.memory_space<vmem>>, %arg6: memref<1x128xf32, #tpu.memory_space<vmem>>, %arg7: memref<64x128xf32, #tpu.memory_space<vmem>>, %arg8: memref<1x8x128xf32, #tpu.memory_space<vmem>>, %arg9: memref<64x128xf32, #tpu.memory_space<vmem>>) attributes {dimension_semantics = [], scalar_prefetch = 0 : i64, scratch_operands = 1 : i64, tpu.core_type = #tpu.core_type<tc>} {
    %c0 = arith.constant 0 : index
    %c0_0 = arith.constant 0 : index
    %0 = vector.load %arg0[%c0, %c0_0] : memref<64x28xf32, #tpu.memory_space<vmem>>, vector<64x28xf32>
    %c0_1 = arith.constant 0 : index
    %c0_2 = arith.constant 0 : index
    %1 = vector.load %arg2[%c0_1, %c0_2] : memref<28x128xf32, #tpu.memory_space<vmem>>, vector<28x128xf32>
    %cst = arith.constant dense<0.000000e+00> : vector<64x128xf32>
    %2 = tpu.matmul %0, %1, %cst {dimension_numbers = #tpu.dot_dimension_numbers<[1], [0], [0], [1], [0, 0, 1, 1], [], []>} : vector<64x28xf32>, vector<28x128xf32>, vector<64x128xf32> -> vector<64x128xf32>
    %c0_3 = arith.constant 0 : index
    %c0_4 = arith.constant 0 : index
    %3 = vector.load %arg4[%c0_3, %c0_4] : memref<1x128xf32, #tpu.memory_space<vmem>>, vector<1x128xf32>
    %4 = vector.broadcast %3 : vector<1x128xf32> to vector<64x128xf32>
    %5 = arith.addf %2, %4 : vector<64x128xf32>
    %c0_5 = arith.constant 0 : index
    %c0_6 = arith.constant 0 : index
    %6 = vector.load %arg3[%c0_5, %c0_6] : memref<128x128xbf16, #tpu.memory_space<vmem>>, vector<128x128xbf16>
    %c0_7 = arith.constant 0 : index
    %c0_8 = arith.constant 0 : index
    %c0_9 = arith.constant 0 : index
    %7 = vector.load %arg1[%c0_7, %c0_8, %c0_9] : memref<1x8x128xf32, #tpu.memory_space<vmem>>, vector<1x8x128xf32>
    %8 = vector.shape_cast %7 : vector<1x8x128xf32> to vector<8x128xf32>
    %9 = vector.extract_strided_slice %5 {offsets = [0, 0], sizes = [8, 128], strides = [1, 1]} : vector<64x128xf32> to vector<8x128xf32>
    %10 = arith.truncf %8 : vector<8x128xf32> to vector<8x128xbf16>
    %cst_10 = arith.constant dense<0.000000e+00> : vector<8x128xf32>
    %11 = tpu.matmul %10, %6, %cst_10 {dimension_numbers = #tpu.dot_dimension_numbers<[1], [0], [0], [1], [0, 0, 1, 1], [], []>} : vector<8x128xbf16>, vector<128x128xbf16>, vector<8x128xf32> -> vector<8x128xf32>
    %12 = arith.addf %9, %11 : vector<8x128xf32>
    %13 = math.tanh %12 : vector<8x128xf32>
    %c0_11 = arith.constant 0 : index
    %c0_12 = arith.constant 0 : index
    %14 = vector.load %arg9[%c0_11, %c0_12] : memref<64x128xf32, #tpu.memory_space<vmem>>, vector<8x128xf32>
    tpu.vector_store %arg9[%c0_11, %c0_12], %13 {strides = array<i32>} : memref<64x128xf32, #tpu.memory_space<vmem>>, vector<8x128xf32>,
    %15 = vector.extract_strided_slice %5 {offsets = [8, 0], sizes = [8, 128], strides = [1, 1]} : vector<64x128xf32> to vector<8x128xf32>
    %16 = arith.truncf %13 : vector<8x128xf32> to vector<8x128xbf16>
    %cst_13 = arith.constant dense<0.000000e+00> : vector<8x128xf32>
    %17 = tpu.matmul %16, %6, %cst_13 {dimension_numbers = #tpu.dot_dimension_numbers<[1], [0], [0], [1], [0, 0, 1, 1], [], []>} : vector<8x128xbf16>, vector<128x128xbf16>, vector<8x128xf32> -> vector<8x128xf32>
    %18 = arith.addf %15, %17 : vector<8x128xf32>
    %19 = math.tanh %18 : vector<8x128xf32>
    %c8 = arith.constant 8 : index
    %c0_14 = arith.constant 0 : index
    %20 = vector.load %arg9[%c8, %c0_14] : memref<64x128xf32, #tpu.memory_space<vmem>>, vector<8x128xf32>
    tpu.vector_store %arg9[%c8, %c0_14], %19 {strides = array<i32>} : memref<64x128xf32, #tpu.memory_space<vmem>>, vector<8x128xf32>,
    %21 = vector.extract_strided_slice %5 {offsets = [16, 0], sizes = [8, 128], strides = [1, 1]} : vector<64x128xf32> to vector<8x128xf32>
    %22 = arith.truncf %19 : vector<8x128xf32> to vector<8x128xbf16>
    %cst_15 = arith.constant dense<0.000000e+00> : vector<8x128xf32>
    %23 = tpu.matmul %22, %6, %cst_15 {dimension_numbers = #tpu.dot_dimension_numbers<[1], [0], [0], [1], [0, 0, 1, 1], [], []>} : vector<8x128xbf16>, vector<128x128xbf16>, vector<8x128xf32> -> vector<8x128xf32>
    %24 = arith.addf %21, %23 : vector<8x128xf32>
    %25 = math.tanh %24 : vector<8x128xf32>
    %c16 = arith.constant 16 : index
    %c0_16 = arith.constant 0 : index
    %26 = vector.load %arg9[%c16, %c0_16] : memref<64x128xf32, #tpu.memory_space<vmem>>, vector<8x128xf32>
    tpu.vector_store %arg9[%c16, %c0_16], %25 {strides = array<i32>} : memref<64x128xf32, #tpu.memory_space<vmem>>, vector<8x128xf32>,
    %27 = vector.extract_strided_slice %5 {offsets = [24, 0], sizes = [8, 128], strides = [1, 1]} : vector<64x128xf32> to vector<8x128xf32>
    %28 = arith.truncf %25 : vector<8x128xf32> to vector<8x128xbf16>
    %cst_17 = arith.constant dense<0.000000e+00> : vector<8x128xf32>
    %29 = tpu.matmul %28, %6, %cst_17 {dimension_numbers = #tpu.dot_dimension_numbers<[1], [0], [0], [1], [0, 0, 1, 1], [], []>} : vector<8x128xbf16>, vector<128x128xbf16>, vector<8x128xf32> -> vector<8x128xf32>
    %30 = arith.addf %27, %29 : vector<8x128xf32>
    %31 = math.tanh %30 : vector<8x128xf32>
    %c24 = arith.constant 24 : index
    %c0_18 = arith.constant 0 : index
    %32 = vector.load %arg9[%c24, %c0_18] : memref<64x128xf32, #tpu.memory_space<vmem>>, vector<8x128xf32>
    tpu.vector_store %arg9[%c24, %c0_18], %31 {strides = array<i32>} : memref<64x128xf32, #tpu.memory_space<vmem>>, vector<8x128xf32>,
    %33 = vector.extract_strided_slice %5 {offsets = [32, 0], sizes = [8, 128], strides = [1, 1]} : vector<64x128xf32> to vector<8x128xf32>
    %34 = arith.truncf %31 : vector<8x128xf32> to vector<8x128xbf16>
    %cst_19 = arith.constant dense<0.000000e+00> : vector<8x128xf32>
    %35 = tpu.matmul %34, %6, %cst_19 {dimension_numbers = #tpu.dot_dimension_numbers<[1], [0], [0], [1], [0, 0, 1, 1], [], []>} : vector<8x128xbf16>, vector<128x128xbf16>, vector<8x128xf32> -> vector<8x128xf32>
    %36 = arith.addf %33, %35 : vector<8x128xf32>
    %37 = math.tanh %36 : vector<8x128xf32>
    %c32 = arith.constant 32 : index
    %c0_20 = arith.constant 0 : index
    %38 = vector.load %arg9[%c32, %c0_20] : memref<64x128xf32, #tpu.memory_space<vmem>>, vector<8x128xf32>
    tpu.vector_store %arg9[%c32, %c0_20], %37 {strides = array<i32>} : memref<64x128xf32, #tpu.memory_space<vmem>>, vector<8x128xf32>,
    %39 = vector.extract_strided_slice %5 {offsets = [40, 0], sizes = [8, 128], strides = [1, 1]} : vector<64x128xf32> to vector<8x128xf32>
    %40 = arith.truncf %37 : vector<8x128xf32> to vector<8x128xbf16>
    %cst_21 = arith.constant dense<0.000000e+00> : vector<8x128xf32>
    %41 = tpu.matmul %40, %6, %cst_21 {dimension_numbers = #tpu.dot_dimension_numbers<[1], [0], [0], [1], [0, 0, 1, 1], [], []>} : vector<8x128xbf16>, vector<128x128xbf16>, vector<8x128xf32> -> vector<8x128xf32>
    %42 = arith.addf %39, %41 : vector<8x128xf32>
    %43 = math.tanh %42 : vector<8x128xf32>
    %c40 = arith.constant 40 : index
    %c0_22 = arith.constant 0 : index
    %44 = vector.load %arg9[%c40, %c0_22] : memref<64x128xf32, #tpu.memory_space<vmem>>, vector<8x128xf32>
    tpu.vector_store %arg9[%c40, %c0_22], %43 {strides = array<i32>} : memref<64x128xf32, #tpu.memory_space<vmem>>, vector<8x128xf32>,
    %45 = vector.extract_strided_slice %5 {offsets = [48, 0], sizes = [8, 128], strides = [1, 1]} : vector<64x128xf32> to vector<8x128xf32>
    %46 = arith.truncf %43 : vector<8x128xf32> to vector<8x128xbf16>
    %cst_23 = arith.constant dense<0.000000e+00> : vector<8x128xf32>
    %47 = tpu.matmul %46, %6, %cst_23 {dimension_numbers = #tpu.dot_dimension_numbers<[1], [0], [0], [1], [0, 0, 1, 1], [], []>} : vector<8x128xbf16>, vector<128x128xbf16>, vector<8x128xf32> -> vector<8x128xf32>
    %48 = arith.addf %45, %47 : vector<8x128xf32>
    %49 = math.tanh %48 : vector<8x128xf32>
    %c48 = arith.constant 48 : index
    %c0_24 = arith.constant 0 : index
    %50 = vector.load %arg9[%c48, %c0_24] : memref<64x128xf32, #tpu.memory_space<vmem>>, vector<8x128xf32>
    tpu.vector_store %arg9[%c48, %c0_24], %49 {strides = array<i32>} : memref<64x128xf32, #tpu.memory_space<vmem>>, vector<8x128xf32>,
    %51 = vector.extract_strided_slice %5 {offsets = [56, 0], sizes = [8, 128], strides = [1, 1]} : vector<64x128xf32> to vector<8x128xf32>
    %52 = arith.truncf %49 : vector<8x128xf32> to vector<8x128xbf16>
    %cst_25 = arith.constant dense<0.000000e+00> : vector<8x128xf32>
    %53 = tpu.matmul %52, %6, %cst_25 {dimension_numbers = #tpu.dot_dimension_numbers<[1], [0], [0], [1], [0, 0, 1, 1], [], []>} : vector<8x128xbf16>, vector<128x128xbf16>, vector<8x128xf32> -> vector<8x128xf32>
    %54 = arith.addf %51, %53 : vector<8x128xf32>
    %55 = math.tanh %54 : vector<8x128xf32>
    %c56 = arith.constant 56 : index
    %c0_26 = arith.constant 0 : index
    %56 = vector.load %arg9[%c56, %c0_26] : memref<64x128xf32, #tpu.memory_space<vmem>>, vector<8x128xf32>
    tpu.vector_store %arg9[%c56, %c0_26], %55 {strides = array<i32>} : memref<64x128xf32, #tpu.memory_space<vmem>>, vector<8x128xf32>,
    %c0_27 = arith.constant 0 : index
    %c0_28 = arith.constant 0 : index
    %c0_29 = arith.constant 0 : index
    %57 = vector.load %arg8[%c0_27, %c0_28, %c0_29] : memref<1x8x128xf32, #tpu.memory_space<vmem>>, vector<1x8x128xf32>
    %58 = vector.shape_cast %57 : vector<1x8x128xf32> to vector<8x128xf32>
    %59 = vector.shape_cast %55 : vector<8x128xf32> to vector<1x8x128xf32>
    tpu.vector_store %arg8[%c0_27, %c0_28, %c0_29], %59 {strides = array<i32>} : memref<1x8x128xf32, #tpu.memory_space<vmem>>, vector<1x8x128xf32>,
    %c0_30 = arith.constant 0 : index
    %c0_31 = arith.constant 0 : index
    %60 = vector.load %arg9[%c0_30, %c0_31] : memref<64x128xf32, #tpu.memory_space<vmem>>, vector<64x128xf32>
    %c0_32 = arith.constant 0 : index
    %c0_33 = arith.constant 0 : index
    %61 = vector.load %arg5[%c0_32, %c0_33] : memref<128x128xf32, #tpu.memory_space<vmem>>, vector<128x128xf32>
    %cst_34 = arith.constant dense<0.000000e+00> : vector<64x128xf32>
    %62 = tpu.matmul %60, %61, %cst_34 {dimension_numbers = #tpu.dot_dimension_numbers<[1], [0], [0], [1], [0, 0, 1, 1], [], []>} : vector<64x128xf32>, vector<128x128xf32>, vector<64x128xf32> -> vector<64x128xf32>
    %c0_35 = arith.constant 0 : index
    %c0_36 = arith.constant 0 : index
    %63 = vector.load %arg6[%c0_35, %c0_36] : memref<1x128xf32, #tpu.memory_space<vmem>>, vector<1x128xf32>
    %64 = vector.broadcast %63 : vector<1x128xf32> to vector<64x128xf32>
    %65 = arith.addf %62, %64 : vector<64x128xf32>
    %c0_37 = arith.constant 0 : index
    %c0_38 = arith.constant 0 : index
    %66 = vector.load %arg7[%c0_37, %c0_38] : memref<64x128xf32, #tpu.memory_space<vmem>>, vector<64x128xf32>
    tpu.vector_store %arg7[%c0_37, %c0_38], %65 {strides = array<i32>} : memref<64x128xf32, #tpu.memory_space<vmem>>, vector<64x128xf32>,
    return
  }
}

</mosaic_0001>

<bundles_post_ra>
// kernel: tpu_custom_call.1
= control target key start
LH: loop header
LB: loop body
LE: loop exit
PB: predicated region body
PF: predicated region fallthrough
CT: control target
= control target key end

     0   :  { %14 = vsyncpa [#allocation4], 0  ;;  %s1717_s0 = inlined_call_operand.vmem [shape: f32[64,28], index: 0, kind: input, shape index: {}]   ;;  %s1718_s1 = inlined_call_operand.hbm [shape: f32[1,8,128], index: 1, kind: input, shape index: {}]   ;;  %s1719_s2 = inlined_call_operand.vmem [shape: f32[28,128], index: 2, kind: input, shape index: {}]   ;;  %s1720_s3 = inlined_call_operand.vmem [shape: bf16[128,128], index: 3, kind: input, shape index: {}]   ;;  %s1721_s4 = inlined_call_operand.vmem [shape: f32[1,128], index: 4, kind: input, shape index: {}]   ;;  %s1722_s5 = inlined_call_operand.hbm [shape: f32[128,128], index: 5, kind: input, shape index: {}]   ;;  %s1723_s6 = inlined_call_operand.vmem [shape: f32[1,128], index: 6, kind: input, shape index: {}]   ;;  %s1724_s7 = inlined_call_operand.hbm [shape: f32[64,128], index: 7, kind: output, shape index: {0}]   ;;  %s1725_s8 = inlined_call_operand.hbm [shape: f32[1,8,128], index: 8, kind: output, shape index: {1}]  }
   0x1   :  { %15 = vsyncpa [#allocation7], 0 }
   0x2   :  { %16 = vsyncpa [#allocation5], 0 }
   0x3   :  { %17 = vsyncpa [#allocation10], 0  ;;  %s1307_s27 = smov [#allocation3]   ;;  %s1308_s29 = smov [#allocation6]  }
   0x4   :  { %s26_s28 = sshll.u32 %s1307_s27, 4  ;;  %s41_s30 = sshll.u32 %s1308_s29, 4  ;;  %s27_s28 = int_to_ptr.vmem [resolvable:$true] %s26_s28  ;;  %s42_s30 = int_to_ptr.vmem [resolvable:$true] %s41_s30 }
   0x5   :  { %s1227_s9 = scalar_lea.vmem %s27_s28, 128  ;;  %p1232_p1 = scmp.lt.s32.totalorder %s27_s28, %s27_s28 }
   0x6   :  { %p1228_p0 = scmp.ne.s32.totalorder %s27_s28, %s1227_s9  ;;  %p1233_p2 = scmp.lt.s32.totalorder %s1227_s9, %s1227_s9 }
   0x8   :  { %p1234_p3 = por %p1233_p2, %p1232_p1 }
   0xa   :  { %p1235_p4 = pnand %p1234_p3, %p1228_p0 }
   0xc   :  { %1238 = shalt.err (!%p1235_p4)
}
   0xd   :  { %29 = dma.hbm_to_vmem [thread:$0]  %s1718_s1, 128, %s27_s28, [#allocation4]  }
   0xe   :  { %s1247_s12 = scalar_lea.vmem %s42_s30, 2048  ;;  %p1252_p6 = scmp.lt.s32.totalorder %s42_s30, %s42_s30 }
   0xf   :  { %p1248_p5 = scmp.ne.s32.totalorder %s42_s30, %s1247_s12  ;;  %p1253_p7 = scmp.lt.s32.totalorder %s1247_s12, %s1247_s12 }
  0x11   :  { %p1254_p8 = por %p1253_p7, %p1252_p6 }
  0x13   :  { %p1255_p9 = pnand %p1254_p8, %p1248_p5 }
  0x15   :  { %1258 = shalt.err (!%p1255_p9)
}
  0x16   :  { %s1309_s13 = smov 128   ;;  %s1310_s14 = smov 8  }
  0x17   :  { %47 = dma.hbm_to_vmem [thread:$0]  %s1722_s5, 2048, %s42_s30, [#allocation7], %s1309_s13, %s1309_s13, %s1310_s14  }
  0x18   :  { %1299 = dma.done.wait [#allocation4], 128  }
  0x19   :  { %1300 = vsyncadd [#allocation4], 4294967168 }
  0x1a   :  { %1301 = dma.done.wait [#allocation7], 2048  }
  0x1b   :  { %1302 = vsyncadd [#allocation7], 4294965248  ;;  %v1311_v0 = vmov 0.0   ;;  %vm1312_vm0 = vmmov 0   ;;  %v1375_v1 = vld [vmem:[%s1720_s3 + $0x38] sm:$0xff]   ;;  %v1381_v2 = vld [vmem:[%s1720_s3 + $0x30] sm:$0xff]  }
  0x1c   :  { %951 = vmatprep.subr.bf16.mxu1 %v1311_v0  ;;  %967 = vmatprep.mubr.msk.bf16.mxu1 %vm1312_vm0, %v1311_v0  ;;  %vm101_vm1 = vcmask 1043456   ;;  %v68_v3 = vld [vmem:[%s1719_s2 + $0x18] sm:$0xf]  ;;  %v67_v4 = vld [vmem:[%s1719_s2 + $0x10] sm:$0xff]  ;;  %vm76_vm2 = vcmask 228352   ;;  %v1394_v5 = vld [vmem:[%s1720_s3 + $0x28] sm:$0xff]  }
  0x1d   :  { %952 = vmatpush3.bf16.msra.mxu1 %v1375_v1  ;;  %931 = vmatprep.subr.msk.mxu0 %vm101_vm1, %v68_v3  ;;  %v66_v6 = vld [vmem:[%s1719_s2 + $0x8] sm:$0xff]  ;;  %v57_v7 = vld [vmem:[%s1717_s0] sm:$0xff]  ;;  %v1421_v11 = vld [vmem:[%s1720_s3 + $0x18] sm:$0xff]  }
  0x1e   :  { %953 = vmatprep.subr.bf16.mxu1 %v1311_v0  ;;  %932 = vmatpush3.msk.msra.mxu0 %vm101_vm1, %v68_v3  ;;  %v65_v8 = vld [vmem:[%s1719_s2] sm:$0xff]  ;;  %v58_v10 = vld [vmem:[%s1717_s0 + $0x8] sm:$0xff]  ;;  %v1432_v12 = vld [vmem:[%s1720_s3 + $0x10] sm:$0xff]  }
  0x1f   :  { %933 = vmatprep.subr.mxu0 %v67_v4  ;;  %939 = vmatprep.mubr.msk.f32.mxu0 %vm76_vm2, %v57_v7  ;;  %v1411_v9 = vld [vmem:[%s1720_s3 + $0x20] sm:$0xff]   ;;  %v1441_v13 = vld [vmem:[%s1720_s3 + $0x8] sm:$0xff]   ;;  %v59_v17 = vld [vmem:[%s1717_s0 + $0x10] sm:$0xff] }
  0x20   :  { %934 = vmatpush3.msra.mxu0 %v67_v4  ;;  %v1450_v14 = vld [vmem:[%s1720_s3] sm:$0xff]   ;;  %v60_v18 = vld [vmem:[%s1717_s0 + $0x18] sm:$0xff]  ;;  %v62_v20 = vld [vmem:[%s1717_s0 + $0x28] sm:$0xff] }
  0x21   :  { %954 = vmatpush3.bf16.msra.mxu1 %v1381_v2  ;;  %935 = vmatprep.subr.mxu0 %v66_v6  ;;  %v226_v15 = vld [vmem:[#allocation3] sm:$0xff]  ;;  %v63_v21 = vld [vmem:[%s1717_s0 + $0x30] sm:$0xff]  ;;  %v64_v22 = vld [vmem:[%s1717_s0 + $0x38] sm:$0xff] }
  0x22   :  { %955 = vmatprep.subr.bf16.mxu1 %v1311_v0  ;;  %936 = vmatpush3.msra.mxu0 %v66_v6  ;;  %v227_v16 = vpack.c.bf16 %v226_v15, %v226_v15  ;;  %v61_v19 = vld [vmem:[%s1717_s0 + $0x20] sm:$0xff] }
  0x23   :  { %937 = vmatprep.subr.mxu0 %v65_v8  ;;  %v1512_v24 = vld [vmem:[%s1721_s4] ss:$0 sm:$0xff] }
  0x24   :  { %938 = vmatpush3.msra.mxu0 %v65_v8 }
  0x25   :  { %956 = vmatpush3.bf16.msra.mxu1 %v1394_v5  ;;  %940 = vmatmul.mubr.msk.f32.vlgmr.msra.gmra.mxu0 %vm76_vm2, %v58_v10 }
  0x26   :  { %957 = vmatprep.subr.bf16.mxu1 %v1311_v0  ;;  %971 = vmatprep.subr.bf16.mxu0 %v1311_v0 }
  0x27   :  { %972 = vmatpush3.bf16.msra.mxu0 %v1375_v1  ;;  %942 = vmatprep.mubr.msk.f32.mxu0 %vm76_vm2, %v59_v17 }
  0x28   :  { %973 = vmatprep.subr.bf16.mxu0 %v1311_v0 }
  0x29   :  { %958 = vmatpush3.bf16.msra.mxu1 %v1411_v9  ;;  %943 = vmatmul.mubr.msk.f32.gmra.mxu0 %vm76_vm2, %v60_v18 }
  0x2a   :  { %959 = vmatprep.subr.bf16.mxu1 %v1311_v0  ;;  %945 = vmatprep.mubr.msk.f32.mxu0 %vm76_vm2, %v61_v19  ;;  %v648_v19 = vld [vmem:[#allocation6 + $0x60] sm:$0xff] }
  0x2b   :  { %974 = vmatpush3.bf16.msra.mxu0 %v1381_v2 }
  0x2c   :  { %975 = vmatprep.subr.bf16.mxu0 %v1311_v0 }
  0x2d   :  { %960 = vmatpush3.bf16.msra.mxu1 %v1421_v11  ;;  %946 = vmatmul.mubr.msk.f32.gmra.mxu0 %vm76_vm2, %v62_v20  ;;  %v647_v20 = vld [vmem:[#allocation6 + $0x58] sm:$0xff] }
  0x2e   :  { %961 = vmatprep.subr.bf16.mxu1 %v1311_v0  ;;  %948 = vmatprep.mubr.msk.f32.mxu0 %vm76_vm2, %v63_v21  ;;  %v646_v21 = vld [vmem:[#allocation6 + $0x50] sm:$0xff] }
  0x2f   :  { %976 = vmatpush3.bf16.msra.mxu0 %v1394_v5 }
  0x30   :  { %977 = vmatprep.subr.bf16.mxu0 %v1311_v0 }
  0x31   :  { %962 = vmatpush3.bf16.msra.mxu1 %v1432_v12  ;;  %949 = vmatmul.mubr.msk.f32.gmra.mxu0 %vm76_vm2, %v64_v22  ;;  %v645_v22 = vld [vmem:[#allocation6 + $0x48] sm:$0xff] }
  0x32   :  { %963 = vmatprep.subr.bf16.mxu1 %v1311_v0  ;;  %987 = vmatprep.mubr.msk.bf16.mxu0 %vm1312_vm0, %v1311_v0 }
  0x33   :  { %978 = vmatpush3.bf16.msra.mxu0 %v1411_v9 }
  0x34   :  { %979 = vmatprep.subr.bf16.mxu0 %v1311_v0 }
  0x35   :  { %964 = vmatpush3.bf16.msra.mxu1 %v1441_v13 }
  0x36   :  { %965 = vmatprep.subr.bf16.mxu1 %v1311_v0 }
  0x37   :  { %980 = vmatpush3.bf16.msra.mxu0 %v1421_v11 }
  0x38   :  { %981 = vmatprep.subr.bf16.mxu0 %v1311_v0 }
  0x39   :  { %966 = vmatpush3.bf16.msra.mxu1 %v1450_v14 }
  0x3a   :  { %991 = vmatprep.subr.bf16.mxu1 %v1311_v0 }
  0x3b   :  { %982 = vmatpush3.bf16.msra.mxu0 %v1432_v12 }
  0x3c   :  { %968 = vmatmul.mubr.bf16.vlgmr.msra.gmra.mxu1 %v227_v16  ;;  %983 = vmatprep.subr.bf16.mxu0 %v1311_v0 }
  0x3d   :  { %992 = vmatpush3.bf16.msra.mxu1 %v1375_v1  ;;  %1007 = vmatprep.mubr.msk.bf16.mxu1 %vm1312_vm0, %v1311_v0 }
  0x3e   :  { %993 = vmatprep.subr.bf16.mxu1 %v1311_v0 }
  0x3f   :  { %984 = vmatpush3.bf16.msra.mxu0 %v1441_v13 }
  0x40   :  { %985 = vmatprep.subr.bf16.mxu0 %v1311_v0 }
  0x41   :  { %994 = vmatpush3.bf16.msra.mxu1 %v1381_v2 }
  0x42   :  { %995 = vmatprep.subr.bf16.mxu1 %v1311_v0 }
  0x43   :  { %986 = vmatpush3.bf16.msra.mxu0 %v1450_v14 }
  0x44   :  { %1011 = vmatprep.subr.bf16.mxu0 %v1311_v0 }
  0x45   :  { %996 = vmatpush3.bf16.msra.mxu1 %v1394_v5 }
  0x46   :  { %997 = vmatprep.subr.bf16.mxu1 %v1311_v0 }
  0x49   :  { %998 = vmatpush3.bf16.msra.mxu1 %v1411_v9 }
  0x4a   :  { %999 = vmatprep.subr.bf16.mxu1 %v1311_v0 }
  0x4d   :  { %1000 = vmatpush3.bf16.msra.mxu1 %v1421_v11 }
  0x4e   :  { %1001 = vmatprep.subr.bf16.mxu1 %v1311_v0 }
  0x51   :  { %1002 = vmatpush3.bf16.msra.mxu1 %v1432_v12 }
  0x52   :  { %1003 = vmatprep.subr.bf16.mxu1 %v1311_v0 }
  0x55   :  { %1004 = vmatpush3.bf16.msra.mxu1 %v1441_v13 }
  0x56   :  { %1005 = vmatprep.subr.bf16.mxu1 %v1311_v0 }
  0x59   :  { %1006 = vmatpush3.bf16.msra.mxu1 %v1450_v14 }
  0x5a   :  { %1031 = vmatprep.subr.bf16.mxu1 %v1311_v0 }
  0xe5   :  { %v941_v23 = vpop.f32.mrf.mxu0 }
  0xe6   :  { %v177_v40 = vadd.f32 %v941_v23, %v1512_v24  ;;  %v644_v23 = vld [vmem:[#allocation6 + $0x40] sm:$0xff] }
  0xe7   :  { %v171_v25 = vpop.f32.mrf.mxu0 }
  0xe8   :  { %v172_v26 = vadd.f32 %v1512_v24, %v171_v25  ;;  %v643_v25 = vld [vmem:[#allocation6 + $0x38] sm:$0xff] }
  0xe9   :  { %v944_v34 = vpop.f32.mrf.mxu0 }
  0xea   :  { %v187_v56 = vadd.f32 %v944_v34, %v1512_v24 }
  0xeb   :  { %v181_v35 = vpop.f32.mrf.mxu0 }
  0xec   :  { %v182_v48 = vadd.f32 %v1512_v24, %v181_v35 }
  0xed   :  { %v1537_v36 = vpop.f32.mrf.mxu0 }
  0xef   :  { %v1539_v37 = vpop.f32.mrf.mxu0 }
  0xf0   :  { %v192_v3 = vadd.f32 %v1512_v24, %v1539_v37 }
  0xf1   :  { %v1541_v38 = vpop.f32.mrf.mxu0 }
  0xf3   :  { %v1543_v39 = vpop.f32.mrf.mxu0 }
  0xf4   :  { %v202_v34 = vadd.f32 %v1512_v24, %v1543_v39  ;;  %v1683_v39 = vld [vmem:[%s1723_s6] ss:$0 sm:$0xff]  ;;  %s1313_s6 = smov [#allocation9]  }
  0xf5   :  { %s790_s11 = sshll.u32 %s1313_s6, 4  ;;  %s791_s11 = int_to_ptr.vmem [resolvable:$true] %s790_s11 }
  0xf6   :  { %s1259_s12 = scalar_lea.vmem %s791_s11, 128  ;;  %p1264_p11 = scmp.lt.s32.totalorder %s791_s11, %s791_s11 }
  0xf7   :  { %p1260_p10 = scmp.ne.s32.totalorder %s791_s11, %s1259_s12  ;;  %p1265_p12 = scmp.lt.s32.totalorder %s1259_s12, %s1259_s12 }
  0xf9   :  { %p1266_p13 = por %p1265_p12, %p1264_p11 }
  0xfb   :  { %p1267_p0 = pnand %p1266_p13, %p1260_p10 }
  0xfc   :  { %v310_v27 = vpop.f32.mrf.mxu1 }
  0xfd   :  { %v316_v28 = vadd.f32 %v310_v27, %v172_v26  ;;  %v1648_v26 = vld [vmem:[#allocation6 + $0x30] sm:$0xff]  ;;  %v1650_v27 = vld [vmem:[#allocation6 + $0x28] sm:$0xff] }
  0xfe   :  { %v969_v29 = vpop.f32.mrf.mxu1 }
  0xff   :  { %1203 = vtanh.f32 %v316_v28  ;;  %v1654_v28 = vld [vmem:[#allocation6 + $0x20] sm:$0xff]  ;;  %v1658_v29 = vld [vmem:[#allocation6 + $0x18] sm:$0xff] }
 0x100   :  { %v313_v30 = vpop.f32.mrf.mxu1 }
 0x101   :  { %v1662_v30 = vld [vmem:[#allocation6 + $0x10] sm:$0xff] }
 0x102   :  { %v970_v31 = vpop.f32.mrf.mxu1 }
 0x103   :  { %v1666_v31 = vld [vmem:[#allocation6 + $0x8] sm:$0xff] }
 0x10c   :  { %v1515_v32 = vpop.eup %1203 }
 0x10d   :  { %v319_v33 = vpack.c.bf16 %v1515_v32, %v1515_v32 }
 0x10f   :  { %988 = vmatmul.mubr.bf16.vlgmr.msra.gmra.mxu0 %v319_v33  ;;  %v636_v33 = vld [vmem:[#allocation6] sm:$0xff] }
 0x110   :  { %1012 = vmatpush3.bf16.msra.mxu0 %v1375_v1  ;;  %1027 = vmatprep.mubr.msk.bf16.mxu0 %vm1312_vm0, %v1311_v0 }
 0x111   :  { %1013 = vmatprep.subr.bf16.mxu0 %v1311_v0 }
 0x114   :  { %1014 = vmatpush3.bf16.msra.mxu0 %v1381_v2 }
 0x115   :  { %1015 = vmatprep.subr.bf16.mxu0 %v1311_v0 }
 0x118   :  { %1016 = vmatpush3.bf16.msra.mxu0 %v1394_v5 }
 0x119   :  { %1017 = vmatprep.subr.bf16.mxu0 %v1311_v0 }
 0x11c   :  { %1018 = vmatpush3.bf16.msra.mxu0 %v1411_v9 }
 0x11d   :  { %1019 = vmatprep.subr.bf16.mxu0 %v1311_v0 }
 0x120   :  { %1020 = vmatpush3.bf16.msra.mxu0 %v1421_v11 }
 0x121   :  { %1021 = vmatprep.subr.bf16.mxu0 %v1311_v0 }
 0x124   :  { %1022 = vmatpush3.bf16.msra.mxu0 %v1432_v12 }
 0x125   :  { %1023 = vmatprep.subr.bf16.mxu0 %v1311_v0 }
 0x128   :  { %1024 = vmatpush3.bf16.msra.mxu0 %v1441_v13 }
 0x129   :  { %1025 = vmatprep.subr.bf16.mxu0 %v1311_v0 }
 0x12c   :  { %1026 = vmatpush3.bf16.msra.mxu0 %v1450_v14 }
 0x12d   :  { %1051 = vmatprep.subr.bf16.mxu0 %v1311_v0 }
 0x1cf   :  { %v354_v41 = vpop.f32.mrf.mxu0 }
 0x1d0   :  { %v360_v42 = vadd.f32 %v354_v41, %v177_v40 }
 0x1d1   :  { %v989_v43 = vpop.f32.mrf.mxu0 }
 0x1d2   :  { %1205 = vtanh.f32 %v360_v42 }
 0x1d3   :  { %v357_v44 = vpop.f32.mrf.mxu0 }
 0x1d5   :  { %v990_v45 = vpop.f32.mrf.mxu0 }
 0x1df   :  { %v1546_v46 = vpop.eup %1205 }
 0x1e0   :  { %v363_v47 = vpack.c.bf16 %v1546_v46, %v1546_v46 }
 0x1e2   :  { %1008 = vmatmul.mubr.bf16.vlgmr.msra.gmra.mxu1 %v363_v47 }
 0x1e3   :  { %1032 = vmatpush3.bf16.msra.mxu1 %v1375_v1  ;;  %1047 = vmatprep.mubr.msk.bf16.mxu1 %vm1312_vm0, %v1311_v0 }
 0x1e4   :  { %1033 = vmatprep.subr.bf16.mxu1 %v1311_v0 }
 0x1e7   :  { %1034 = vmatpush3.bf16.msra.mxu1 %v1381_v2 }
 0x1e8   :  { %1035 = vmatprep.subr.bf16.mxu1 %v1311_v0 }
 0x1eb   :  { %1036 = vmatpush3.bf16.msra.mxu1 %v1394_v5 }
 0x1ec   :  { %1037 = vmatprep.subr.bf16.mxu1 %v1311_v0 }
 0x1ef   :  { %1038 = vmatpush3.bf16.msra.mxu1 %v1411_v9 }
 0x1f0   :  { %1039 = vmatprep.subr.bf16.mxu1 %v1311_v0 }
 0x1f3   :  { %1040 = vmatpush3.bf16.msra.mxu1 %v1421_v11 }
 0x1f4   :  { %1041 = vmatprep.subr.bf16.mxu1 %v1311_v0 }
 0x1f7   :  { %1042 = vmatpush3.bf16.msra.mxu1 %v1432_v12 }
 0x1f8   :  { %1043 = vmatprep.subr.bf16.mxu1 %v1311_v0 }
 0x1fb   :  { %1044 = vmatpush3.bf16.msra.mxu1 %v1441_v13 }
 0x1fc   :  { %1045 = vmatprep.subr.bf16.mxu1 %v1311_v0 }
 0x1ff   :  { %1046 = vmatpush3.bf16.msra.mxu1 %v1450_v14 }
 0x200   :  { %1071 = vmatprep.subr.bf16.mxu1 %v1311_v0 }
 0x2a2   :  { %v398_v49 = vpop.f32.mrf.mxu1 }
 0x2a3   :  { %v404_v50 = vadd.f32 %v398_v49, %v182_v48 }
 0x2a4   :  { %v1009_v51 = vpop.f32.mrf.mxu1 }
 0x2a5   :  { %1207 = vtanh.f32 %v404_v50 }
 0x2a6   :  { %v401_v52 = vpop.f32.mrf.mxu1 }
 0x2a7   :  { %v207_v52 = vadd.f32 %v1541_v38, %v1512_v24 }
 0x2a8   :  { %v1010_v53 = vpop.f32.mrf.mxu1 }
 0x2b2   :  { %v1569_v54 = vpop.eup %1207 }
 0x2b3   :  { %v407_v55 = vpack.c.bf16 %v1569_v54, %v1569_v54 }
 0x2b5   :  { %1028 = vmatmul.mubr.bf16.vlgmr.msra.gmra.mxu0 %v407_v55 }
 0x2b6   :  { %1052 = vmatpush3.bf16.msra.mxu0 %v1375_v1  ;;  %1067 = vmatprep.mubr.msk.bf16.mxu0 %vm1312_vm0, %v1311_v0 }
 0x2b7   :  { %1053 = vmatprep.subr.bf16.mxu0 %v1311_v0 }
 0x2ba   :  { %1054 = vmatpush3.bf16.msra.mxu0 %v1381_v2 }
 0x2bb   :  { %1055 = vmatprep.subr.bf16.mxu0 %v1311_v0 }
 0x2be   :  { %1056 = vmatpush3.bf16.msra.mxu0 %v1394_v5 }
 0x2bf   :  { %1057 = vmatprep.subr.bf16.mxu0 %v1311_v0 }
 0x2c2   :  { %1058 = vmatpush3.bf16.msra.mxu0 %v1411_v9 }
 0x2c3   :  { %1059 = vmatprep.subr.bf16.mxu0 %v1311_v0 }
 0x2c6   :  { %1060 = vmatpush3.bf16.msra.mxu0 %v1421_v11 }
 0x2c7   :  { %1061 = vmatprep.subr.bf16.mxu0 %v1311_v0 }
 0x2ca   :  { %1062 = vmatpush3.bf16.msra.mxu0 %v1432_v12 }
 0x2cb   :  { %1063 = vmatprep.subr.bf16.mxu0 %v1311_v0 }
 0x2ce   :  { %1064 = vmatpush3.bf16.msra.mxu0 %v1441_v13 }
 0x2cf   :  { %1065 = vmatprep.subr.bf16.mxu0 %v1311_v0 }
 0x2d2   :  { %1066 = vmatpush3.bf16.msra.mxu0 %v1450_v14 }
 0x2d3   :  { %1091 = vmatprep.subr.bf16.mxu0 %v1311_v0 }
 0x375   :  { %v442_v57 = vpop.f32.mrf.mxu0 }
 0x376   :  { %v448_v58 = vadd.f32 %v442_v57, %v187_v56 }
 0x377   :  { %v1029_v59 = vpop.f32.mrf.mxu0 }
 0x378   :  { %1209 = vtanh.f32 %v448_v58 }
 0x379   :  { %v445_v60 = vpop.f32.mrf.mxu0 }
 0x37b   :  { %v1030_v61 = vpop.f32.mrf.mxu0 }
 0x385   :  { %v1592_v62 = vpop.eup %1209 }
 0x386   :  { %v451_v63 = vpack.c.bf16 %v1592_v62, %v1592_v62 }
 0x388   :  { %1048 = vmatmul.mubr.bf16.vlgmr.msra.gmra.mxu1 %v451_v63 }
 0x389   :  { %1072 = vmatpush3.bf16.msra.mxu1 %v1375_v1  ;;  %1087 = vmatprep.mubr.msk.bf16.mxu1 %vm1312_vm0, %v1311_v0 }
 0x38a   :  { %1073 = vmatprep.subr.bf16.mxu1 %v1311_v0 }
 0x38d   :  { %1074 = vmatpush3.bf16.msra.mxu1 %v1381_v2 }
 0x38e   :  { %1075 = vmatprep.subr.bf16.mxu1 %v1311_v0 }
 0x391   :  { %1076 = vmatpush3.bf16.msra.mxu1 %v1394_v5 }
 0x392   :  { %1077 = vmatprep.subr.bf16.mxu1 %v1311_v0 }
 0x395   :  { %1078 = vmatpush3.bf16.msra.mxu1 %v1411_v9 }
 0x396   :  { %1079 = vmatprep.subr.bf16.mxu1 %v1311_v0 }
 0x399   :  { %1080 = vmatpush3.bf16.msra.mxu1 %v1421_v11 }
 0x39a   :  { %1081 = vmatprep.subr.bf16.mxu1 %v1311_v0 }
 0x39d   :  { %1082 = vmatpush3.bf16.msra.mxu1 %v1432_v12 }
 0x39e   :  { %1083 = vmatprep.subr.bf16.mxu1 %v1311_v0 }
 0x3a1   :  { %1084 = vmatpush3.bf16.msra.mxu1 %v1441_v13 }
 0x3a2   :  { %1085 = vmatprep.subr.bf16.mxu1 %v1311_v0 }
 0x3a5   :  { %1086 = vmatpush3.bf16.msra.mxu1 %v1450_v14 }
 0x448   :  { %v486_v4 = vpop.f32.mrf.mxu1 }
 0x449   :  { %v492_v6 = vadd.f32 %v486_v4, %v192_v3 }
 0x44a   :  { %v1049_v7 = vpop.f32.mrf.mxu1 }
 0x44b   :  { %1211 = vtanh.f32 %v492_v6 }
 0x44c   :  { %v489_v8 = vpop.f32.mrf.mxu1 }
 0x44e   :  { %v1050_v10 = vpop.f32.mrf.mxu1 }
 0x458   :  { %v1615_v15 = vpop.eup %1211 }
 0x459   :  { %v495_v16 = vpack.c.bf16 %v1615_v15, %v1615_v15 }
 0x45b   :  { %1068 = vmatmul.mubr.bf16.vlgmr.msra.gmra.mxu0 %v495_v16 }
 0x45c   :  { %1092 = vmatpush3.bf16.msra.mxu0 %v1375_v1  ;;  %1107 = vmatprep.mubr.msk.bf16.mxu0 %vm1312_vm0, %v1311_v0  ;;  %v1636_v1 = vld [vmem:[#allocation6 + $0x78] sm:$0xff] }
 0x45d   :  { %1093 = vmatprep.subr.bf16.mxu0 %v1311_v0  ;;  %1155 = vmatprep.subr.mxu1 %v1636_v1 }
 0x460   :  { %1094 = vmatpush3.bf16.msra.mxu0 %v1381_v2  ;;  %v197_v2 = vadd.f32 %v1537_v36, %v1512_v24 }
 0x461   :  { %1095 = vmatprep.subr.bf16.mxu0 %v1311_v0 }
 0x464   :  { %1096 = vmatpush3.bf16.msra.mxu0 %v1394_v5 }
 0x465   :  { %1097 = vmatprep.subr.bf16.mxu0 %v1311_v0 }
 0x468   :  { %1098 = vmatpush3.bf16.msra.mxu0 %v1411_v9 }
 0x469   :  { %1099 = vmatprep.subr.bf16.mxu0 %v1311_v0 }
 0x46c   :  { %1100 = vmatpush3.bf16.msra.mxu0 %v1421_v11 }
 0x46d   :  { %1101 = vmatprep.subr.bf16.mxu0 %v1311_v0 }
 0x470   :  { %1102 = vmatpush3.bf16.msra.mxu0 %v1432_v12 }
 0x471   :  { %1103 = vmatprep.subr.bf16.mxu0 %v1311_v0 }
 0x474   :  { %1104 = vmatpush3.bf16.msra.mxu0 %v1441_v13 }
 0x475   :  { %1105 = vmatprep.subr.bf16.mxu0 %v1311_v0  ;;  %v1642_v0 = vld [vmem:[#allocation6 + $0x70] sm:$0xff] }
 0x478   :  { %1106 = vmatpush3.bf16.msra.mxu0 %v1450_v14  ;;  %v649_v14 = vld [vmem:[#allocation6 + $0x68] sm:$0xff] }
 0x479   :  { %1111 = vmatprep.subr.mxu0 %v1636_v1 }
 0x51b   :  { %v530_v5 = vpop.f32.mrf.mxu0 }
 0x51c   :  { %v536_v9 = vadd.f32 %v530_v5, %v197_v2 }
 0x51d   :  { %v1069_v11 = vpop.f32.mrf.mxu0 }
 0x51e   :  { %1213 = vtanh.f32 %v536_v9 }
 0x51f   :  { %v533_v12 = vpop.f32.mrf.mxu0 }
 0x521   :  { %v1070_v17 = vpop.f32.mrf.mxu0 }
 0x52b   :  { %v1214_v13 = vpop.eup %1213 }
 0x52c   :  { %v539_v18 = vpack.c.bf16 %v1214_v13, %v1214_v13 }
 0x52e   :  { %1088 = vmatmul.mubr.bf16.vlgmr.msra.gmra.mxu1 %v539_v18 }
 0x52f   :  { %1171 = vmatpush3.msra.mxu1 %v1636_v1  ;;  %1146 = vmatprep.mubr.f32.mxu1 %v1569_v54 }
 0x530   :  { %1156 = vmatprep.subr.mxu1 %v1642_v0 }
 0x531   :  { %1172 = vmatpush3.msra.mxu1 %v1642_v0 }
 0x532   :  { %1157 = vmatprep.subr.mxu1 %v649_v14 }
 0x533   :  { %1173 = vmatpush3.msra.mxu1 %v649_v14 }
 0x534   :  { %1158 = vmatprep.subr.mxu1 %v648_v19 }
 0x535   :  { %1174 = vmatpush3.msra.mxu1 %v648_v19 }
 0x536   :  { %1159 = vmatprep.subr.mxu1 %v647_v20 }
 0x537   :  { %1175 = vmatpush3.msra.mxu1 %v647_v20 }
 0x538   :  { %1160 = vmatprep.subr.mxu1 %v646_v21 }
 0x539   :  { %1176 = vmatpush3.msra.mxu1 %v646_v21 }
 0x53a   :  { %1161 = vmatprep.subr.mxu1 %v645_v22 }
 0x53b   :  { %1177 = vmatpush3.msra.mxu1 %v645_v22 }
 0x53c   :  { %1162 = vmatprep.subr.mxu1 %v644_v23 }
 0x53d   :  { %1178 = vmatpush3.msra.mxu1 %v644_v23 }
 0x53e   :  { %1163 = vmatprep.subr.mxu1 %v643_v25 }
 0x53f   :  { %1179 = vmatpush3.msra.mxu1 %v643_v25 }
 0x540   :  { %1164 = vmatprep.subr.mxu1 %v1648_v26 }
 0x541   :  { %1180 = vmatpush3.msra.mxu1 %v1648_v26 }
 0x542   :  { %1165 = vmatprep.subr.mxu1 %v1650_v27 }
 0x543   :  { %1181 = vmatpush3.msra.mxu1 %v1650_v27 }
 0x544   :  { %1166 = vmatprep.subr.mxu1 %v1654_v28 }
 0x545   :  { %1182 = vmatpush3.msra.mxu1 %v1654_v28 }
 0x546   :  { %1167 = vmatprep.subr.mxu1 %v1658_v29 }
 0x547   :  { %1183 = vmatpush3.msra.mxu1 %v1658_v29 }
 0x548   :  { %1168 = vmatprep.subr.mxu1 %v1662_v30 }
 0x549   :  { %1184 = vmatpush3.msra.mxu1 %v1662_v30 }
 0x54a   :  { %1169 = vmatprep.subr.mxu1 %v1666_v31 }
 0x54b   :  { %1185 = vmatpush3.msra.mxu1 %v1666_v31 }
 0x54c   :  { %1170 = vmatprep.subr.mxu1 %v636_v33 }
 0x54d   :  { %1186 = vmatpush3.msra.mxu1 %v636_v33 }
 0x54e   :  { %1147 = vmatmul.mubr.f32.vlgmr.msra.gmra.mxu1 %v1592_v62 }
 0x54f   :  { %1149 = vmatprep.mubr.f32.mxu1 %v1615_v15 }
 0x552   :  { %1150 = vmatmul.mubr.f32.gmra.mxu1 %v1214_v13 }
 0x5ee   :  { %v574_v35 = vpop.f32.mrf.mxu1 }
 0x5ef   :  { %v580_v36 = vadd.f32 %v574_v35, %v202_v34 }
 0x5f0   :  { %v1089_v37 = vpop.f32.mrf.mxu1 }
 0x5f1   :  { %1215 = vtanh.f32 %v580_v36 }
 0x5f2   :  { %v577_v40 = vpop.f32.mrf.mxu1 }
 0x5f4   :  { %v1090_v41 = vpop.f32.mrf.mxu1 }
 0x5fe   :  { %v1216_v42 = vpop.eup %1215 }
 0x5ff   :  { %1152 = vmatprep.mubr.f32.mxu1 %v1216_v42  ;;  %v583_v43 = vpack.c.bf16 %v1216_v42, %v1216_v42 }
 0x601   :  { %1108 = vmatmul.mubr.bf16.vlgmr.msra.gmra.mxu0 %v583_v43 }
 0x602   :  { %1112 = vmatpush3.msra.mxu0 %v1636_v1  ;;  %1143 = vmatprep.mubr.f32.mxu0 %v1515_v32 }
 0x603   :  { %1113 = vmatprep.subr.mxu0 %v1642_v0 }
 0x604   :  { %1114 = vmatpush3.msra.mxu0 %v1642_v0 }
 0x605   :  { %1115 = vmatprep.subr.mxu0 %v649_v14 }
 0x606   :  { %1116 = vmatpush3.msra.mxu0 %v649_v14 }
 0x607   :  { %1117 = vmatprep.subr.mxu0 %v648_v19 }
 0x608   :  { %1118 = vmatpush3.msra.mxu0 %v648_v19 }
 0x609   :  { %1119 = vmatprep.subr.mxu0 %v647_v20 }
 0x60a   :  { %1120 = vmatpush3.msra.mxu0 %v647_v20 }
 0x60b   :  { %1121 = vmatprep.subr.mxu0 %v646_v21 }
 0x60c   :  { %1122 = vmatpush3.msra.mxu0 %v646_v21 }
 0x60d   :  { %1123 = vmatprep.subr.mxu0 %v645_v22 }
 0x60e   :  { %1124 = vmatpush3.msra.mxu0 %v645_v22  ;;  %v1148_v32 = vpop.f32.mrf.mxu1 }
 0x60f   :  { %v741_v44 = vadd.f32 %v1148_v32, %v1683_v39  ;;  %1125 = vmatprep.subr.mxu0 %v644_v23 }
 0x610   :  { %1126 = vmatpush3.msra.mxu0 %v644_v23  ;;  %v735_v45 = vpop.f32.mrf.mxu1 }
 0x611   :  { %767 = vst [vmem:[#allocation8 + $0x18] sm:$0xff] %v741_v44  ;;  %v736_v47 = vadd.f32 %v1683_v39, %v735_v45  ;;  %1127 = vmatprep.subr.mxu0 %v643_v25 }
 0x612   :  { %1128 = vmatpush3.msra.mxu0 %v643_v25  ;;  %v1151_v48 = vpop.f32.mrf.mxu1 }
 0x613   :  { %766 = vst [vmem:[#allocation8 + $0x10] sm:$0xff] %v736_v47  ;;  %v751_v49 = vadd.f32 %v1151_v48, %v1683_v39  ;;  %1129 = vmatprep.subr.mxu0 %v1648_v26 }
 0x614   :  { %1130 = vmatpush3.msra.mxu0 %v1648_v26  ;;  %v745_v50 = vpop.f32.mrf.mxu1 }
 0x615   :  { %769 = vst [vmem:[#allocation8 + $0x28] sm:$0xff] %v751_v49  ;;  %v746_v51 = vadd.f32 %v1683_v39, %v745_v50  ;;  %1131 = vmatprep.subr.mxu0 %v1650_v27 }
 0x616   :  { %1132 = vmatpush3.msra.mxu0 %v1650_v27 }
 0x617   :  { %768 = vst [vmem:[#allocation8 + $0x20] sm:$0xff] %v746_v51  ;;  %1133 = vmatprep.subr.mxu0 %v1654_v28 }
 0x618   :  { %1134 = vmatpush3.msra.mxu0 %v1654_v28 }
 0x619   :  { %1135 = vmatprep.subr.mxu0 %v1658_v29 }
 0x61a   :  { %1136 = vmatpush3.msra.mxu0 %v1658_v29 }
 0x61b   :  { %1137 = vmatprep.subr.mxu0 %v1662_v30 }
 0x61c   :  { %1138 = vmatpush3.msra.mxu0 %v1662_v30 }
 0x61d   :  { %1139 = vmatprep.subr.mxu0 %v1666_v31 }
 0x61e   :  { %1140 = vmatpush3.msra.mxu0 %v1666_v31 }
 0x61f   :  { %1141 = vmatprep.subr.mxu0 %v636_v33 }
 0x620   :  { %1142 = vmatpush3.msra.mxu0 %v636_v33 }
 0x621   :  { %1144 = vmatmul.mubr.f32.vlgmr.msra.gmra.mxu0 %v1546_v46 }
 0x6c1   :  { %v618_v53 = vpop.f32.mrf.mxu0 }
 0x6c2   :  { %v624_v54 = vadd.f32 %v618_v53, %v207_v52 }
 0x6c3   :  { %v1109_v55 = vpop.f32.mrf.mxu0 }
 0x6c4   :  { %1217 = vtanh.f32 %v624_v54 }
 0x6c5   :  { %v621_v56 = vpop.f32.mrf.mxu0 }
 0x6c7   :  { %v1110_v57 = vpop.f32.mrf.mxu0 }
 0x6d1   :  { %v1218_v58 = vpop.eup %1217 }
 0x6d2   :  { %627 = vst [vmem:[#allocation9] sm:$0xff] %v1218_v58  ;;  %1153 = vmatmul.mubr.f32.gmra.mxu1 %v1218_v58 }
 0x6e1   :  { %v1145_v59 = vpop.f32.mrf.mxu0 }
 0x6e2   :  { %v731_v60 = vadd.f32 %v1145_v59, %v1683_v39 }
 0x6e3   :  { %v725_v61 = vpop.f32.mrf.mxu0 }
 0x6e4   :  { %765 = vst [vmem:[#allocation8 + $0x8] sm:$0xff] %v731_v60  ;;  %v726_v62 = vadd.f32 %v1683_v39, %v725_v61 }
 0x6e6   :  { %764 = vst [vmem:[#allocation8] sm:$0xff] %v726_v62 }
 0x6e7   :  { %1270 = shalt.err (!%p1267_p0)
}
 0x6e8   :  { %793 = dma.vmem_to_hbm [thread:$0]  %s791_s11, 128, %s1725_s8, [#allocation10]  }
 0x6e9   :  { %s1314_s16 = smov [#allocation8]  }
 0x6ea   :  { %s777_s1 = sshll.u32 %s1314_s16, 4  ;;  %s778_s1 = int_to_ptr.vmem [resolvable:$true] %s777_s1 }
 0x6eb   :  { %s1279_s17 = scalar_lea.vmem %s778_s1, 1024  ;;  %p1284_p2 = scmp.lt.s32.totalorder %s778_s1, %s778_s1 }
 0x6ec   :  { %p1280_p1 = scmp.ne.s32.totalorder %s778_s1, %s1279_s17  ;;  %p1285_p3 = scmp.lt.s32.totalorder %s1279_s17, %s1279_s17 }
 0x6ee   :  { %p1286_p4 = por %p1285_p3, %p1284_p2 }
 0x6f0   :  { %p1287_p5 = pnand %p1286_p4, %p1280_p1 }
 0x792   :  { %v1154_v24 = vpop.f32.mrf.mxu1 }
 0x793   :  { %v761_v38 = vadd.f32 %v1154_v24, %v1683_v39 }
 0x794   :  { %v755_v46 = vpop.f32.mrf.mxu1 }
 0x795   :  { %771 = vst [vmem:[#allocation8 + $0x38] sm:$0xff] %v761_v38  ;;  %v756_v63 = vadd.f32 %v1683_v39, %v755_v46 }
 0x797   :  { %770 = vst [vmem:[#allocation8 + $0x30] sm:$0xff] %v756_v63 }
 0x798   :  { %1290 = shalt.err (!%p1287_p5)
}
 0x799   :  { %783 = dma.vmem_to_hbm [thread:$0]  %s778_s1, 1024, %s1724_s7, [#allocation5], %s1309_s13, %s1309_s13, %s1310_s14  }
 0x79a   :  { %1303 = dma.done.wait [#allocation5], 1024  }
 0x79b   :  { %1304 = vsyncadd [#allocation5], 4294966272 }
 0x79c   :  { %1305 = dma.done.wait [#allocation10], 128  }
 0x79d   :  { %1306 = vsyncadd [#allocation10], 4294967168 }
 0x79e   :  { %800 = vsyncpa [#allocation4], 1 }
 0x79f   :  { %801 = vsyncpa [#allocation7], 1 }
 0x7a0   :  { %802 = vsyncpa [#allocation5], 1 }
 0x7a1   :  { %803 = vsyncpa [#allocation10], 1 }

</bundles_post_ra>
